<compile_context>
chip_gen: v6e
topology: v6e:2x2x1
jax: 0.10.0
libtpu: 0.0.40
codegen_flags: <defaults>
</compile_context>

<pallas_src>
import functools

import jax
import jax.numpy as jnp
from jax import lax
from jax.experimental import pallas as pl
from jax.experimental.pallas import tpu as pltpu


def _vectornet_loss_kernel(reg_ref, side_ref, o_ref, *, pred_len, num_mode,
                           cls_th, cls_ignore, mgn_th, cls_coef, reg_coef):
    T = pred_len
    M = num_mode
    MT = M * T
    tn = side_ref.shape[0]

    side = side_ref[...]                                   # [tn, 3T+M]
    gt_x = side[:, 0:T]
    gt_y = side[:, T:2 * T]
    has = side[:, 2 * T:3 * T]
    cls = side[:, 3 * T:3 * T + M]

    reg = reg_ref[...]                                     # [tn, 2*M*T]

    t_idx = lax.broadcasted_iota(jnp.int32, (tn, T), 1)
    last = has + 0.1 * t_idx.astype(jnp.float32) / float(T)

    max_last = jnp.max(last, axis=1, keepdims=True)        # [tn, 1]
    valid = (max_last > 1.0).astype(jnp.float32)           # row mask
    # `last` values are strictly distinct within a row (increasing ramp), so the
    # argmax one-hot is a single equality compare -> one XLU reduction saved.
    oh_t = (last == max_last).astype(jnp.float32)          # [tn, T]

    gtl_x = jnp.sum(oh_t * gt_x, axis=1, keepdims=True)    # [tn, 1]
    gtl_y = jnp.sum(oh_t * gt_y, axis=1, keepdims=True)

    # Pass 1 over the (unrolled) mode loop: endpoint distance per mode and a
    # running first-index argmin.  Keeps live intermediates to a few row-vregs
    # instead of materializing [tn, M, T] broadcast temporaries.
    rx_slices = []
    ry_slices = []
    dists = []
    min_dist = None
    min_ids = None
    for j in range(M):
        rx = reg[:, j * T:(j + 1) * T]                     # [tn, T]
        ry = reg[:, MT + j * T:MT + (j + 1) * T]
        rx_slices.append(rx)
        ry_slices.append(ry)
        dx = jnp.sum(oh_t * rx, axis=1, keepdims=True) - gtl_x
        dy = jnp.sum(oh_t * ry, axis=1, keepdims=True) - gtl_y
        dj = jnp.sqrt(dx * dx + dy * dy)                   # [tn, 1]
        dists.append(dj)
        if j == 0:
            min_dist = dj
            min_ids = jnp.zeros_like(dj, dtype=jnp.int32)
        else:
            better = dj < min_dist                         # strict -> first index wins
            min_ids = jnp.where(better, j, min_ids)
            min_dist = jnp.where(better, dj, min_dist)

    # cls score of the best mode.
    m_idx = lax.broadcasted_iota(jnp.int32, (tn, M), 1)
    oh_m = (m_idx == min_ids).astype(jnp.float32)          # [tn, M]
    cls_best = jnp.sum(oh_m * cls, axis=1, keepdims=True)  # [tn, 1]

    # Pass 2 over modes: max-margin classification terms + gather of the best
    # mode's trajectory (accumulated, no [tn, M, T] temporaries).
    base_sel = valid * (min_dist < cls_th).astype(jnp.float32)
    row_cnt = jnp.zeros((tn, 1), jnp.float32)
    row_mgn = jnp.zeros((tn, 1), jnp.float32)
    regs_x = jnp.zeros((tn, T), jnp.float32)
    regs_y = jnp.zeros((tn, T), jnp.float32)
    for j in range(M):
        mgn_j = cls_best - cls[:, j:j + 1]                 # [tn, 1]
        sel_j = base_sel * ((dists[j] - min_dist) > cls_ignore).astype(jnp.float32)
        mask_j = sel_j * (mgn_j < mgn_th).astype(jnp.float32)
        row_cnt += mask_j
        row_mgn += mgn_j * mask_j
        is_best = (min_ids == j).astype(jnp.float32)       # [tn, 1]
        regs_x += is_best * rx_slices[j]
        regs_y += is_best * ry_slices[j]

    num_cls = jnp.sum(row_cnt)
    cls_loss = cls_coef * (mgn_th * num_cls - jnp.sum(row_mgn))

    # Smooth-L1 (beta=1, reduction='sum') on the selected mode, masked by
    # (valid row) & (has_preds).
    def smooth_l1(d):
        ad = jnp.abs(d)
        return jnp.where(ad < 1.0, 0.5 * ad * ad, ad - 0.5)

    w = valid * has                                        # [tn, T]
    reg_loss = reg_coef * jnp.sum(w * (smooth_l1(regs_x - gt_x)
                                       + smooth_l1(regs_y - gt_y)))
    num_reg = jnp.sum(w)

    # Per-tile partials written into lanes 0..3 of an (8,128) block.
    lane = lax.broadcasted_iota(jnp.int32, (8, 128), 1)
    blk = (jnp.where(lane == 0, cls_loss, 0.0)
           + jnp.where(lane == 1, num_cls, 0.0)
           + jnp.where(lane == 2, reg_loss, 0.0)
           + jnp.where(lane == 3, num_reg, 0.0))
    o_ref[0] = blk


def _round_up(a, b):
    return (a + b - 1) // b * b


def mhld_loss(out, data, cfg):
    M = int(cfg['num_mode'])
    T = int(cfg['pred_len'])

    # Glue (mirrors torch.cat over scene lists).
    cls = jnp.concatenate(list(out['cls']), axis=0).astype(jnp.float32)          # [N, M]
    reg = jnp.concatenate(list(out['reg']), axis=0).astype(jnp.float32)          # [N, M, T, 2]
    gt = jnp.concatenate(list(data['gt_preds']), axis=0).astype(jnp.float32)     # [N, T, 2]
    has = (jnp.concatenate(list(data['has_preds']), axis=0) == 1).astype(jnp.float32)  # [N, T]

    N = cls.shape[0]

    # Single-pass layout transforms to lane-dense kernel inputs:
    #   reg: [N, M, T, 2] -> [N, 2, M, T] -> [N, 2*M*T]   (x-plane | y-plane)
    #   side: gt_x | gt_y | has | cls  packed into one [N, 3T+M] array.
    reg_p = jnp.transpose(reg, (0, 3, 1, 2)).reshape(N, 2 * M * T)
    gt_p = jnp.transpose(gt, (0, 2, 1)).reshape(N, 2 * T)
    side = jnp.concatenate([gt_p, has, cls], axis=1)                              # [N, 3T+M]

    # Tile the actor dimension (padded rows have has=0 -> contribute nothing).
    tn = min(512, _round_up(max(N, 1), 8))
    num_tiles = pl.cdiv(N, tn)
    n_pad = num_tiles * tn
    if n_pad != N:
        reg_p = jnp.pad(reg_p, ((0, n_pad - N), (0, 0)))
        side = jnp.pad(side, ((0, n_pad - N), (0, 0)))

    kernel = functools.partial(
        _vectornet_loss_kernel,
        pred_len=T, num_mode=M,
        cls_th=float(cfg['cls_th']), cls_ignore=float(cfg['cls_ignore']),
        mgn_th=float(cfg['mgn']), cls_coef=float(cfg['cls_coef']),
        reg_coef=float(cfg['reg_coef']))

    partials = pl.pallas_call(
        kernel,
        out_shape=jax.ShapeDtypeStruct((num_tiles, 8, 128), jnp.float32),
        grid=(num_tiles,),
        in_specs=[
            pl.BlockSpec((tn, 2 * M * T), lambda i: (i, 0)),
            pl.BlockSpec((tn, 3 * T + M), lambda i: (i, 0)),
        ],
        out_specs=pl.BlockSpec((1, 8, 128), lambda i: (i, 0, 0)),
        compiler_params=pltpu.CompilerParams(
            dimension_semantics=("parallel",),
            vmem_limit_bytes=32 * 1024 * 1024),
    )(reg_p, side)

    stats = jnp.sum(partials[:, 0, :4], axis=0)
    cls_loss, num_cls, reg_loss, num_reg = stats[0], stats[1], stats[2], stats[3]
    loss = cls_loss / (num_cls + 1e-10) + reg_loss / (num_reg + 1e-10)
    return {'cls_loss': cls_loss, 'num_cls': num_cls,
            'reg_loss': reg_loss, 'num_reg': num_reg, 'loss': loss}


if __name__ == "__main__":
    cfg = dict(num_mode=6, pred_len=30, cls_th=2.0, cls_ignore=0.2,
               mgn=0.2, cls_coef=1.0, reg_coef=1.0)

    B = 2          # number of scenes (lists that get concatenated)
    n_actors = 4   # actors per scene -> N = 8 total
    M, T = cfg['num_mode'], cfg['pred_len']

    key = jax.random.PRNGKey(0)
    keys = jax.random.split(key, 4 * B)

    cls_list, reg_list, gt_list, has_list = [], [], [], []
    for b in range(B):
        k0, k1, k2, k3 = keys[4 * b:4 * b + 4]
        cls_list.append(jax.random.normal(k0, (n_actors, M), jnp.float32))
        reg_list.append(2.0 * jax.random.normal(k1, (n_actors, M, T, 2), jnp.float32))
        gt_list.append(2.0 * jax.random.normal(k2, (n_actors, T, 2), jnp.float32))
        has_list.append((jax.random.uniform(k3, (n_actors, T)) > 0.3).astype(jnp.int32))

    out = {'cls': cls_list, 'reg': reg_list}
    data = {'gt_preds': gt_list, 'has_preds': has_list}

    loss_out = mhld_loss(out, data, cfg)
    jax.block_until_ready(loss_out['loss'])
    print("KERNEL_OK")
</pallas_src>

<mosaic_0001>
module attributes {stable_mosaic.version = 11 : i64} {
  func.func @_vectornet_loss_kernel(%arg0: i32, %arg1: memref<8x360xf32, #tpu.memory_space<vmem>>, %arg2: memref<8x96xf32, #tpu.memory_space<vmem>>, %arg3: memref<1x8x128xf32, #tpu.memory_space<vmem>>) attributes {dimension_semantics = [#tpu.dimension_semantics<parallel>], iteration_bounds = array<i64: 1>, scalar_prefetch = 0 : i64, scratch_operands = 0 : i64, tpu.core_type = #tpu.core_type<tc>, window_params = [{transform_indices = @transform_0, window_bounds = array<i64: 8, 360>}, {transform_indices = @transform_1, window_bounds = array<i64: 8, 96>}, {transform_indices = @transform_2, window_bounds = array<i64: 1, 8, 128>}]} {
    %c0 = arith.constant 0 : index
    %c0_0 = arith.constant 0 : index
    %0 = vector.load %arg2[%c0, %c0_0] : memref<8x96xf32, #tpu.memory_space<vmem>>, vector<8x96xf32>
    %1 = vector.extract_strided_slice %0 {offsets = [0, 0], sizes = [8, 30], strides = [1, 1]} : vector<8x96xf32> to vector<8x30xf32>
    %2 = vector.extract_strided_slice %0 {offsets = [0, 30], sizes = [8, 30], strides = [1, 1]} : vector<8x96xf32> to vector<8x30xf32>
    %3 = vector.extract_strided_slice %0 {offsets = [0, 60], sizes = [8, 30], strides = [1, 1]} : vector<8x96xf32> to vector<8x30xf32>
    %4 = vector.extract_strided_slice %0 {offsets = [0, 90], sizes = [8, 6], strides = [1, 1]} : vector<8x96xf32> to vector<8x6xf32>
    %c0_1 = arith.constant 0 : index
    %c0_2 = arith.constant 0 : index
    %5 = vector.load %arg1[%c0_1, %c0_2] : memref<8x360xf32, #tpu.memory_space<vmem>>, vector<8x360xf32>
    %6 = tpu.iota {dimensions = array<i32: 1>} : vector<8x30xi32>
    %7 = arith.sitofp %6 : vector<8x30xi32> to vector<8x30xf32>
    %cst = arith.constant 1.000000e-01 : f32
    %8 = vector.broadcast %cst : f32 to vector<8x30xf32>
    %9 = arith.mulf %8, %7 : vector<8x30xf32>
    %cst_3 = arith.constant 3.000000e+01 : f32
    %10 = vector.broadcast %cst_3 : f32 to vector<8x30xf32>
    %11 = arith.divf %9, %10 : vector<8x30xf32>
    %12 = arith.addf %3, %11 : vector<8x30xf32>
    %cst_4 = arith.constant dense<0xFF800000> : vector<8xf32>
    %13 = vector.multi_reduction <maximumf>, %12, %cst_4 [1] : vector<8x30xf32> to vector<8xf32>
    %14 = vector.shape_cast %13 : vector<8xf32> to vector<8x1xf32>
    %cst_5 = arith.constant 1.000000e+00 : f32
    %15 = vector.broadcast %cst_5 : f32 to vector<8x1xf32>
    %16 = arith.cmpf ogt, %14, %15 : vector<8x1xf32>
    %17 = arith.extui %16 : vector<8x1xi1> to vector<8x1xi32>
    %18 = arith.sitofp %17 : vector<8x1xi32> to vector<8x1xf32>
    %19 = vector.broadcast %14 : vector<8x1xf32> to vector<8x30xf32>
    %20 = arith.cmpf oeq, %12, %19 : vector<8x30xf32>
    %21 = arith.extui %20 : vector<8x30xi1> to vector<8x30xi32>
    %22 = arith.sitofp %21 : vector<8x30xi32> to vector<8x30xf32>
    %23 = arith.mulf %22, %1 : vector<8x30xf32>
    %cst_6 = arith.constant dense<0.000000e+00> : vector<8xf32>
    %24 = vector.multi_reduction <add>, %23, %cst_6 [1] : vector<8x30xf32> to vector<8xf32>
    %25 = vector.shape_cast %24 : vector<8xf32> to vector<8x1xf32>
    %26 = arith.mulf %22, %2 : vector<8x30xf32>
    %cst_7 = arith.constant dense<0.000000e+00> : vector<8xf32>
    %27 = vector.multi_reduction <add>, %26, %cst_7 [1] : vector<8x30xf32> to vector<8xf32>
    %28 = vector.shape_cast %27 : vector<8xf32> to vector<8x1xf32>
    %29 = vector.extract_strided_slice %5 {offsets = [0, 0], sizes = [8, 30], strides = [1, 1]} : vector<8x360xf32> to vector<8x30xf32>
    %30 = vector.extract_strided_slice %5 {offsets = [0, 180], sizes = [8, 30], strides = [1, 1]} : vector<8x360xf32> to vector<8x30xf32>
    %31 = arith.mulf %22, %29 : vector<8x30xf32>
    %cst_8 = arith.constant dense<0.000000e+00> : vector<8xf32>
    %32 = vector.multi_reduction <add>, %31, %cst_8 [1] : vector<8x30xf32> to vector<8xf32>
    %33 = vector.shape_cast %32 : vector<8xf32> to vector<8x1xf32>
    %34 = arith.subf %33, %25 : vector<8x1xf32>
    %35 = arith.mulf %22, %30 : vector<8x30xf32>
    %cst_9 = arith.constant dense<0.000000e+00> : vector<8xf32>
    %36 = vector.multi_reduction <add>, %35, %cst_9 [1] : vector<8x30xf32> to vector<8xf32>
    %37 = vector.shape_cast %36 : vector<8xf32> to vector<8x1xf32>
    %38 = arith.subf %37, %28 : vector<8x1xf32>
    %39 = arith.mulf %34, %34 : vector<8x1xf32>
    %40 = arith.mulf %38, %38 : vector<8x1xf32>
    %41 = arith.addf %39, %40 : vector<8x1xf32>
    %42 = math.sqrt %41 : vector<8x1xf32>
    %c0_i32 = arith.constant 0 : i32
    %43 = vector.broadcast %c0_i32 : i32 to vector<8x1xi32>
    %44 = vector.extract_strided_slice %5 {offsets = [0, 30], sizes = [8, 30], strides = [1, 1]} : vector<8x360xf32> to vector<8x30xf32>
    %45 = vector.extract_strided_slice %5 {offsets = [0, 210], sizes = [8, 30], strides = [1, 1]} : vector<8x360xf32> to vector<8x30xf32>
    %46 = arith.mulf %22, %44 : vector<8x30xf32>
    %cst_10 = arith.constant dense<0.000000e+00> : vector<8xf32>
    %47 = vector.multi_reduction <add>, %46, %cst_10 [1] : vector<8x30xf32> to vector<8xf32>
    %48 = vector.shape_cast %47 : vector<8xf32> to vector<8x1xf32>
    %49 = arith.subf %48, %25 : vector<8x1xf32>
    %50 = arith.mulf %22, %45 : vector<8x30xf32>
    %cst_11 = arith.constant dense<0.000000e+00> : vector<8xf32>
    %51 = vector.multi_reduction <add>, %50, %cst_11 [1] : vector<8x30xf32> to vector<8xf32>
    %52 = vector.shape_cast %51 : vector<8xf32> to vector<8x1xf32>
    %53 = arith.subf %52, %28 : vector<8x1xf32>
    %54 = arith.mulf %49, %49 : vector<8x1xf32>
    %55 = arith.mulf %53, %53 : vector<8x1xf32>
    %56 = arith.addf %54, %55 : vector<8x1xf32>
    %57 = math.sqrt %56 : vector<8x1xf32>
    %58 = arith.cmpf olt, %57, %42 : vector<8x1xf32>
    %c1_i32 = arith.constant 1 : i32
    %59 = vector.broadcast %c1_i32 : i32 to vector<8x1xi32>
    %60 = arith.select %58, %59, %43 : vector<8x1xi1>, vector<8x1xi32>
    %61 = arith.select %58, %57, %42 : vector<8x1xi1>, vector<8x1xf32>
    %62 = vector.extract_strided_slice %5 {offsets = [0, 60], sizes = [8, 30], strides = [1, 1]} : vector<8x360xf32> to vector<8x30xf32>
    %63 = vector.extract_strided_slice %5 {offsets = [0, 240], sizes = [8, 30], strides = [1, 1]} : vector<8x360xf32> to vector<8x30xf32>
    %64 = arith.mulf %22, %62 : vector<8x30xf32>
    %cst_12 = arith.constant dense<0.000000e+00> : vector<8xf32>
    %65 = vector.multi_reduction <add>, %64, %cst_12 [1] : vector<8x30xf32> to vector<8xf32>
    %66 = vector.shape_cast %65 : vector<8xf32> to vector<8x1xf32>
    %67 = arith.subf %66, %25 : vector<8x1xf32>
    %68 = arith.mulf %22, %63 : vector<8x30xf32>
    %cst_13 = arith.constant dense<0.000000e+00> : vector<8xf32>
    %69 = vector.multi_reduction <add>, %68, %cst_13 [1] : vector<8x30xf32> to vector<8xf32>
    %70 = vector.shape_cast %69 : vector<8xf32> to vector<8x1xf32>
    %71 = arith.subf %70, %28 : vector<8x1xf32>
    %72 = arith.mulf %67, %67 : vector<8x1xf32>
    %73 = arith.mulf %71, %71 : vector<8x1xf32>
    %74 = arith.addf %72, %73 : vector<8x1xf32>
    %75 = math.sqrt %74 : vector<8x1xf32>
    %76 = arith.cmpf olt, %75, %61 : vector<8x1xf32>
    %c2_i32 = arith.constant 2 : i32
    %77 = vector.broadcast %c2_i32 : i32 to vector<8x1xi32>
    %78 = arith.select %76, %77, %60 : vector<8x1xi1>, vector<8x1xi32>
    %79 = arith.select %76, %75, %61 : vector<8x1xi1>, vector<8x1xf32>
    %80 = vector.extract_strided_slice %5 {offsets = [0, 90], sizes = [8, 30], strides = [1, 1]} : vector<8x360xf32> to vector<8x30xf32>
    %81 = vector.extract_strided_slice %5 {offsets = [0, 270], sizes = [8, 30], strides = [1, 1]} : vector<8x360xf32> to vector<8x30xf32>
    %82 = arith.mulf %22, %80 : vector<8x30xf32>
    %cst_14 = arith.constant dense<0.000000e+00> : vector<8xf32>
    %83 = vector.multi_reduction <add>, %82, %cst_14 [1] : vector<8x30xf32> to vector<8xf32>
    %84 = vector.shape_cast %83 : vector<8xf32> to vector<8x1xf32>
    %85 = arith.subf %84, %25 : vector<8x1xf32>
    %86 = arith.mulf %22, %81 : vector<8x30xf32>
    %cst_15 = arith.constant dense<0.000000e+00> : vector<8xf32>
    %87 = vector.multi_reduction <add>, %86, %cst_15 [1] : vector<8x30xf32> to vector<8xf32>
    %88 = vector.shape_cast %87 : vector<8xf32> to vector<8x1xf32>
    %89 = arith.subf %88, %28 : vector<8x1xf32>
    %90 = arith.mulf %85, %85 : vector<8x1xf32>
    %91 = arith.mulf %89, %89 : vector<8x1xf32>
    %92 = arith.addf %90, %91 : vector<8x1xf32>
    %93 = math.sqrt %92 : vector<8x1xf32>
    %94 = arith.cmpf olt, %93, %79 : vector<8x1xf32>
    %c3_i32 = arith.constant 3 : i32
    %95 = vector.broadcast %c3_i32 : i32 to vector<8x1xi32>
    %96 = arith.select %94, %95, %78 : vector<8x1xi1>, vector<8x1xi32>
    %97 = arith.select %94, %93, %79 : vector<8x1xi1>, vector<8x1xf32>
    %98 = vector.extract_strided_slice %5 {offsets = [0, 120], sizes = [8, 30], strides = [1, 1]} : vector<8x360xf32> to vector<8x30xf32>
    %99 = vector.extract_strided_slice %5 {offsets = [0, 300], sizes = [8, 30], strides = [1, 1]} : vector<8x360xf32> to vector<8x30xf32>
    %100 = arith.mulf %22, %98 : vector<8x30xf32>
    %cst_16 = arith.constant dense<0.000000e+00> : vector<8xf32>
    %101 = vector.multi_reduction <add>, %100, %cst_16 [1] : vector<8x30xf32> to vector<8xf32>
    %102 = vector.shape_cast %101 : vector<8xf32> to vector<8x1xf32>
    %103 = arith.subf %102, %25 : vector<8x1xf32>
    %104 = arith.mulf %22, %99 : vector<8x30xf32>
    %cst_17 = arith.constant dense<0.000000e+00> : vector<8xf32>
    %105 = vector.multi_reduction <add>, %104, %cst_17 [1] : vector<8x30xf32> to vector<8xf32>
    %106 = vector.shape_cast %105 : vector<8xf32> to vector<8x1xf32>
    %107 = arith.subf %106, %28 : vector<8x1xf32>
    %108 = arith.mulf %103, %103 : vector<8x1xf32>
    %109 = arith.mulf %107, %107 : vector<8x1xf32>
    %110 = arith.addf %108, %109 : vector<8x1xf32>
    %111 = math.sqrt %110 : vector<8x1xf32>
    %112 = arith.cmpf olt, %111, %97 : vector<8x1xf32>
    %c4_i32 = arith.constant 4 : i32
    %113 = vector.broadcast %c4_i32 : i32 to vector<8x1xi32>
    %114 = arith.select %112, %113, %96 : vector<8x1xi1>, vector<8x1xi32>
    %115 = arith.select %112, %111, %97 : vector<8x1xi1>, vector<8x1xf32>
    %116 = vector.extract_strided_slice %5 {offsets = [0, 150], sizes = [8, 30], strides = [1, 1]} : vector<8x360xf32> to vector<8x30xf32>
    %117 = vector.extract_strided_slice %5 {offsets = [0, 330], sizes = [8, 30], strides = [1, 1]} : vector<8x360xf32> to vector<8x30xf32>
    %118 = arith.mulf %22, %116 : vector<8x30xf32>
    %cst_18 = arith.constant dense<0.000000e+00> : vector<8xf32>
    %119 = vector.multi_reduction <add>, %118, %cst_18 [1] : vector<8x30xf32> to vector<8xf32>
    %120 = vector.shape_cast %119 : vector<8xf32> to vector<8x1xf32>
    %121 = arith.subf %120, %25 : vector<8x1xf32>
    %122 = arith.mulf %22, %117 : vector<8x30xf32>
    %cst_19 = arith.constant dense<0.000000e+00> : vector<8xf32>
    %123 = vector.multi_reduction <add>, %122, %cst_19 [1] : vector<8x30xf32> to vector<8xf32>
    %124 = vector.shape_cast %123 : vector<8xf32> to vector<8x1xf32>
    %125 = arith.subf %124, %28 : vector<8x1xf32>
    %126 = arith.mulf %121, %121 : vector<8x1xf32>
    %127 = arith.mulf %125, %125 : vector<8x1xf32>
    %128 = arith.addf %126, %127 : vector<8x1xf32>
    %129 = math.sqrt %128 : vector<8x1xf32>
    %130 = arith.cmpf olt, %129, %115 : vector<8x1xf32>
    %c5_i32 = arith.constant 5 : i32
    %131 = vector.broadcast %c5_i32 : i32 to vector<8x1xi32>
    %132 = arith.select %130, %131, %114 : vector<8x1xi1>, vector<8x1xi32>
    %133 = arith.select %130, %129, %115 : vector<8x1xi1>, vector<8x1xf32>
    %134 = tpu.iota {dimensions = array<i32: 1>} : vector<8x6xi32>
    %135 = vector.broadcast %132 : vector<8x1xi32> to vector<8x6xi32>
    %136 = arith.cmpi eq, %134, %135 : vector<8x6xi32>
    %137 = arith.extui %136 : vector<8x6xi1> to vector<8x6xi32>
    %138 = arith.sitofp %137 : vector<8x6xi32> to vector<8x6xf32>
    %139 = arith.mulf %138, %4 : vector<8x6xf32>
    %cst_20 = arith.constant dense<0.000000e+00> : vector<8xf32>
    %140 = vector.multi_reduction <add>, %139, %cst_20 [1] : vector<8x6xf32> to vector<8xf32>
    %141 = vector.shape_cast %140 : vector<8xf32> to vector<8x1xf32>
    %cst_21 = arith.constant 2.000000e+00 : f32
    %142 = vector.broadcast %cst_21 : f32 to vector<8x1xf32>
    %143 = arith.cmpf olt, %133, %142 : vector<8x1xf32>
    %144 = arith.extui %143 : vector<8x1xi1> to vector<8x1xi32>
    %145 = arith.sitofp %144 : vector<8x1xi32> to vector<8x1xf32>
    %146 = arith.mulf %18, %145 : vector<8x1xf32>
    %cst_22 = arith.constant 0.000000e+00 : f32
    %147 = vector.broadcast %cst_22 : f32 to vector<8x1xf32>
    %cst_23 = arith.constant 0.000000e+00 : f32
    %148 = vector.broadcast %cst_23 : f32 to vector<8x1xf32>
    %cst_24 = arith.constant 0.000000e+00 : f32
    %149 = vector.broadcast %cst_24 : f32 to vector<8x30xf32>
    %cst_25 = arith.constant 0.000000e+00 : f32
    %150 = vector.broadcast %cst_25 : f32 to vector<8x30xf32>
    %151 = vector.extract_strided_slice %4 {offsets = [0, 0], sizes = [8, 1], strides = [1, 1]} : vector<8x6xf32> to vector<8x1xf32>
    %152 = arith.subf %141, %151 : vector<8x1xf32>
    %153 = arith.subf %42, %133 : vector<8x1xf32>
    %cst_26 = arith.constant 2.000000e-01 : f32
    %154 = vector.broadcast %cst_26 : f32 to vector<8x1xf32>
    %155 = arith.cmpf ogt, %153, %154 : vector<8x1xf32>
    %156 = arith.extui %155 : vector<8x1xi1> to vector<8x1xi32>
    %157 = arith.sitofp %156 : vector<8x1xi32> to vector<8x1xf32>
    %158 = arith.mulf %146, %157 : vector<8x1xf32>
    %cst_27 = arith.constant 2.000000e-01 : f32
    %159 = vector.broadcast %cst_27 : f32 to vector<8x1xf32>
    %160 = arith.cmpf olt, %152, %159 : vector<8x1xf32>
    %161 = arith.extui %160 : vector<8x1xi1> to vector<8x1xi32>
    %162 = arith.sitofp %161 : vector<8x1xi32> to vector<8x1xf32>
    %163 = arith.mulf %158, %162 : vector<8x1xf32>
    %164 = arith.addf %147, %163 : vector<8x1xf32>
    %165 = arith.mulf %152, %163 : vector<8x1xf32>
    %166 = arith.addf %148, %165 : vector<8x1xf32>
    %c0_i32_28 = arith.constant 0 : i32
    %167 = vector.broadcast %c0_i32_28 : i32 to vector<8x1xi32>
    %168 = arith.cmpi eq, %132, %167 : vector<8x1xi32>
    %169 = arith.extui %168 : vector<8x1xi1> to vector<8x1xi32>
    %170 = arith.sitofp %169 : vector<8x1xi32> to vector<8x1xf32>
    %171 = vector.broadcast %170 : vector<8x1xf32> to vector<8x30xf32>
    %172 = arith.mulf %171, %29 : vector<8x30xf32>
    %173 = arith.addf %149, %172 : vector<8x30xf32>
    %174 = vector.broadcast %170 : vector<8x1xf32> to vector<8x30xf32>
    %175 = arith.mulf %174, %30 : vector<8x30xf32>
    %176 = arith.addf %150, %175 : vector<8x30xf32>
    %177 = vector.extract_strided_slice %4 {offsets = [0, 1], sizes = [8, 1], strides = [1, 1]} : vector<8x6xf32> to vector<8x1xf32>
    %178 = arith.subf %141, %177 : vector<8x1xf32>
    %179 = arith.subf %57, %133 : vector<8x1xf32>
    %cst_29 = arith.constant 2.000000e-01 : f32
    %180 = vector.broadcast %cst_29 : f32 to vector<8x1xf32>
    %181 = arith.cmpf ogt, %179, %180 : vector<8x1xf32>
    %182 = arith.extui %181 : vector<8x1xi1> to vector<8x1xi32>
    %183 = arith.sitofp %182 : vector<8x1xi32> to vector<8x1xf32>
    %184 = arith.mulf %146, %183 : vector<8x1xf32>
    %cst_30 = arith.constant 2.000000e-01 : f32
    %185 = vector.broadcast %cst_30 : f32 to vector<8x1xf32>
    %186 = arith.cmpf olt, %178, %185 : vector<8x1xf32>
    %187 = arith.extui %186 : vector<8x1xi1> to vector<8x1xi32>
    %188 = arith.sitofp %187 : vector<8x1xi32> to vector<8x1xf32>
    %189 = arith.mulf %184, %188 : vector<8x1xf32>
    %190 = arith.addf %164, %189 : vector<8x1xf32>
    %191 = arith.mulf %178, %189 : vector<8x1xf32>
    %192 = arith.addf %166, %191 : vector<8x1xf32>
    %c1_i32_31 = arith.constant 1 : i32
    %193 = vector.broadcast %c1_i32_31 : i32 to vector<8x1xi32>
    %194 = arith.cmpi eq, %132, %193 : vector<8x1xi32>
    %195 = arith.extui %194 : vector<8x1xi1> to vector<8x1xi32>
    %196 = arith.sitofp %195 : vector<8x1xi32> to vector<8x1xf32>
    %197 = vector.broadcast %196 : vector<8x1xf32> to vector<8x30xf32>
    %198 = arith.mulf %197, %44 : vector<8x30xf32>
    %199 = arith.addf %173, %198 : vector<8x30xf32>
    %200 = vector.broadcast %196 : vector<8x1xf32> to vector<8x30xf32>
    %201 = arith.mulf %200, %45 : vector<8x30xf32>
    %202 = arith.addf %176, %201 : vector<8x30xf32>
    %203 = vector.extract_strided_slice %4 {offsets = [0, 2], sizes = [8, 1], strides = [1, 1]} : vector<8x6xf32> to vector<8x1xf32>
    %204 = arith.subf %141, %203 : vector<8x1xf32>
    %205 = arith.subf %75, %133 : vector<8x1xf32>
    %cst_32 = arith.constant 2.000000e-01 : f32
    %206 = vector.broadcast %cst_32 : f32 to vector<8x1xf32>
    %207 = arith.cmpf ogt, %205, %206 : vector<8x1xf32>
    %208 = arith.extui %207 : vector<8x1xi1> to vector<8x1xi32>
    %209 = arith.sitofp %208 : vector<8x1xi32> to vector<8x1xf32>
    %210 = arith.mulf %146, %209 : vector<8x1xf32>
    %cst_33 = arith.constant 2.000000e-01 : f32
    %211 = vector.broadcast %cst_33 : f32 to vector<8x1xf32>
    %212 = arith.cmpf olt, %204, %211 : vector<8x1xf32>
    %213 = arith.extui %212 : vector<8x1xi1> to vector<8x1xi32>
    %214 = arith.sitofp %213 : vector<8x1xi32> to vector<8x1xf32>
    %215 = arith.mulf %210, %214 : vector<8x1xf32>
    %216 = arith.addf %190, %215 : vector<8x1xf32>
    %217 = arith.mulf %204, %215 : vector<8x1xf32>
    %218 = arith.addf %192, %217 : vector<8x1xf32>
    %c2_i32_34 = arith.constant 2 : i32
    %219 = vector.broadcast %c2_i32_34 : i32 to vector<8x1xi32>
    %220 = arith.cmpi eq, %132, %219 : vector<8x1xi32>
    %221 = arith.extui %220 : vector<8x1xi1> to vector<8x1xi32>
    %222 = arith.sitofp %221 : vector<8x1xi32> to vector<8x1xf32>
    %223 = vector.broadcast %222 : vector<8x1xf32> to vector<8x30xf32>
    %224 = arith.mulf %223, %62 : vector<8x30xf32>
    %225 = arith.addf %199, %224 : vector<8x30xf32>
    %226 = vector.broadcast %222 : vector<8x1xf32> to vector<8x30xf32>
    %227 = arith.mulf %226, %63 : vector<8x30xf32>
    %228 = arith.addf %202, %227 : vector<8x30xf32>
    %229 = vector.extract_strided_slice %4 {offsets = [0, 3], sizes = [8, 1], strides = [1, 1]} : vector<8x6xf32> to vector<8x1xf32>
    %230 = arith.subf %141, %229 : vector<8x1xf32>
    %231 = arith.subf %93, %133 : vector<8x1xf32>
    %cst_35 = arith.constant 2.000000e-01 : f32
    %232 = vector.broadcast %cst_35 : f32 to vector<8x1xf32>
    %233 = arith.cmpf ogt, %231, %232 : vector<8x1xf32>
    %234 = arith.extui %233 : vector<8x1xi1> to vector<8x1xi32>
    %235 = arith.sitofp %234 : vector<8x1xi32> to vector<8x1xf32>
    %236 = arith.mulf %146, %235 : vector<8x1xf32>
    %cst_36 = arith.constant 2.000000e-01 : f32
    %237 = vector.broadcast %cst_36 : f32 to vector<8x1xf32>
    %238 = arith.cmpf olt, %230, %237 : vector<8x1xf32>
    %239 = arith.extui %238 : vector<8x1xi1> to vector<8x1xi32>
    %240 = arith.sitofp %239 : vector<8x1xi32> to vector<8x1xf32>
    %241 = arith.mulf %236, %240 : vector<8x1xf32>
    %242 = arith.addf %216, %241 : vector<8x1xf32>
    %243 = arith.mulf %230, %241 : vector<8x1xf32>
    %244 = arith.addf %218, %243 : vector<8x1xf32>
    %c3_i32_37 = arith.constant 3 : i32
    %245 = vector.broadcast %c3_i32_37 : i32 to vector<8x1xi32>
    %246 = arith.cmpi eq, %132, %245 : vector<8x1xi32>
    %247 = arith.extui %246 : vector<8x1xi1> to vector<8x1xi32>
    %248 = arith.sitofp %247 : vector<8x1xi32> to vector<8x1xf32>
    %249 = vector.broadcast %248 : vector<8x1xf32> to vector<8x30xf32>
    %250 = arith.mulf %249, %80 : vector<8x30xf32>
    %251 = arith.addf %225, %250 : vector<8x30xf32>
    %252 = vector.broadcast %248 : vector<8x1xf32> to vector<8x30xf32>
    %253 = arith.mulf %252, %81 : vector<8x30xf32>
    %254 = arith.addf %228, %253 : vector<8x30xf32>
    %255 = vector.extract_strided_slice %4 {offsets = [0, 4], sizes = [8, 1], strides = [1, 1]} : vector<8x6xf32> to vector<8x1xf32>
    %256 = arith.subf %141, %255 : vector<8x1xf32>
    %257 = arith.subf %111, %133 : vector<8x1xf32>
    %cst_38 = arith.constant 2.000000e-01 : f32
    %258 = vector.broadcast %cst_38 : f32 to vector<8x1xf32>
    %259 = arith.cmpf ogt, %257, %258 : vector<8x1xf32>
    %260 = arith.extui %259 : vector<8x1xi1> to vector<8x1xi32>
    %261 = arith.sitofp %260 : vector<8x1xi32> to vector<8x1xf32>
    %262 = arith.mulf %146, %261 : vector<8x1xf32>
    %cst_39 = arith.constant 2.000000e-01 : f32
    %263 = vector.broadcast %cst_39 : f32 to vector<8x1xf32>
    %264 = arith.cmpf olt, %256, %263 : vector<8x1xf32>
    %265 = arith.extui %264 : vector<8x1xi1> to vector<8x1xi32>
    %266 = arith.sitofp %265 : vector<8x1xi32> to vector<8x1xf32>
    %267 = arith.mulf %262, %266 : vector<8x1xf32>
    %268 = arith.addf %242, %267 : vector<8x1xf32>
    %269 = arith.mulf %256, %267 : vector<8x1xf32>
    %270 = arith.addf %244, %269 : vector<8x1xf32>
    %c4_i32_40 = arith.constant 4 : i32
    %271 = vector.broadcast %c4_i32_40 : i32 to vector<8x1xi32>
    %272 = arith.cmpi eq, %132, %271 : vector<8x1xi32>
    %273 = arith.extui %272 : vector<8x1xi1> to vector<8x1xi32>
    %274 = arith.sitofp %273 : vector<8x1xi32> to vector<8x1xf32>
    %275 = vector.broadcast %274 : vector<8x1xf32> to vector<8x30xf32>
    %276 = arith.mulf %275, %98 : vector<8x30xf32>
    %277 = arith.addf %251, %276 : vector<8x30xf32>
    %278 = vector.broadcast %274 : vector<8x1xf32> to vector<8x30xf32>
    %279 = arith.mulf %278, %99 : vector<8x30xf32>
    %280 = arith.addf %254, %279 : vector<8x30xf32>
    %281 = vector.extract_strided_slice %4 {offsets = [0, 5], sizes = [8, 1], strides = [1, 1]} : vector<8x6xf32> to vector<8x1xf32>
    %282 = arith.subf %141, %281 : vector<8x1xf32>
    %283 = arith.subf %129, %133 : vector<8x1xf32>
    %cst_41 = arith.constant 2.000000e-01 : f32
    %284 = vector.broadcast %cst_41 : f32 to vector<8x1xf32>
    %285 = arith.cmpf ogt, %283, %284 : vector<8x1xf32>
    %286 = arith.extui %285 : vector<8x1xi1> to vector<8x1xi32>
    %287 = arith.sitofp %286 : vector<8x1xi32> to vector<8x1xf32>
    %288 = arith.mulf %146, %287 : vector<8x1xf32>
    %cst_42 = arith.constant 2.000000e-01 : f32
    %289 = vector.broadcast %cst_42 : f32 to vector<8x1xf32>
    %290 = arith.cmpf olt, %282, %289 : vector<8x1xf32>
    %291 = arith.extui %290 : vector<8x1xi1> to vector<8x1xi32>
    %292 = arith.sitofp %291 : vector<8x1xi32> to vector<8x1xf32>
    %293 = arith.mulf %288, %292 : vector<8x1xf32>
    %294 = arith.addf %268, %293 : vector<8x1xf32>
    %295 = arith.mulf %282, %293 : vector<8x1xf32>
    %296 = arith.addf %270, %295 : vector<8x1xf32>
    %c5_i32_43 = arith.constant 5 : i32
    %297 = vector.broadcast %c5_i32_43 : i32 to vector<8x1xi32>
    %298 = arith.cmpi eq, %132, %297 : vector<8x1xi32>
    %299 = arith.extui %298 : vector<8x1xi1> to vector<8x1xi32>
    %300 = arith.sitofp %299 : vector<8x1xi32> to vector<8x1xf32>
    %301 = vector.broadcast %300 : vector<8x1xf32> to vector<8x30xf32>
    %302 = arith.mulf %301, %116 : vector<8x30xf32>
    %303 = arith.addf %277, %302 : vector<8x30xf32>
    %304 = vector.broadcast %300 : vector<8x1xf32> to vector<8x30xf32>
    %305 = arith.mulf %304, %117 : vector<8x30xf32>
    %306 = arith.addf %280, %305 : vector<8x30xf32>
    %307 = vector.shape_cast %294 : vector<8x1xf32> to vector<1x8x1xf32>
    %cst_44 = arith.constant dense<0.000000e+00> : vector<1xf32>
    %308 = vector.multi_reduction <add>, %307, %cst_44 [1, 2] : vector<1x8x1xf32> to vector<1xf32>
    %309 = vector.shape_cast %308 : vector<1xf32> to vector<1x1x1xf32>
    %310 = vector.extract %309[0, 0, 0] : f32 from vector<1x1x1xf32>
    %cst_45 = arith.constant 2.000000e-01 : f32
    %311 = arith.mulf %cst_45, %310 : f32
    %312 = vector.shape_cast %296 : vector<8x1xf32> to vector<1x8x1xf32>
    %cst_46 = arith.constant dense<0.000000e+00> : vector<1xf32>
    %313 = vector.multi_reduction <add>, %312, %cst_46 [1, 2] : vector<1x8x1xf32> to vector<1xf32>
    %314 = vector.shape_cast %313 : vector<1xf32> to vector<1x1x1xf32>
    %315 = vector.extract %314[0, 0, 0] : f32 from vector<1x1x1xf32>
    %316 = arith.subf %311, %315 : f32
    %cst_47 = arith.constant 1.000000e+00 : f32
    %317 = arith.mulf %cst_47, %316 : f32
    %318 = vector.broadcast %18 : vector<8x1xf32> to vector<8x30xf32>
    %319 = arith.mulf %318, %3 : vector<8x30xf32>
    %320 = arith.subf %303, %1 : vector<8x30xf32>
    %321 = math.absf %320 : vector<8x30xf32>
    %cst_48 = arith.constant 1.000000e+00 : f32
    %322 = vector.broadcast %cst_48 : f32 to vector<8x30xf32>
    %323 = arith.cmpf olt, %321, %322 : vector<8x30xf32>
    %cst_49 = arith.constant 5.000000e-01 : f32
    %324 = vector.broadcast %cst_49 : f32 to vector<8x30xf32>
    %325 = arith.mulf %324, %321 : vector<8x30xf32>
    %326 = arith.mulf %325, %321 : vector<8x30xf32>
    %cst_50 = arith.constant 5.000000e-01 : f32
    %327 = vector.broadcast %cst_50 : f32 to vector<8x30xf32>
    %328 = arith.subf %321, %327 : vector<8x30xf32>
    %329 = arith.select %323, %326, %328 : vector<8x30xi1>, vector<8x30xf32>
    %330 = arith.subf %306, %2 : vector<8x30xf32>
    %331 = math.absf %330 : vector<8x30xf32>
    %cst_51 = arith.constant 1.000000e+00 : f32
    %332 = vector.broadcast %cst_51 : f32 to vector<8x30xf32>
    %333 = arith.cmpf olt, %331, %332 : vector<8x30xf32>
    %cst_52 = arith.constant 5.000000e-01 : f32
    %334 = vector.broadcast %cst_52 : f32 to vector<8x30xf32>
    %335 = arith.mulf %334, %331 : vector<8x30xf32>
    %336 = arith.mulf %335, %331 : vector<8x30xf32>
    %cst_53 = arith.constant 5.000000e-01 : f32
    %337 = vector.broadcast %cst_53 : f32 to vector<8x30xf32>
    %338 = arith.subf %331, %337 : vector<8x30xf32>
    %339 = arith.select %333, %336, %338 : vector<8x30xi1>, vector<8x30xf32>
    %340 = arith.addf %329, %339 : vector<8x30xf32>
    %341 = arith.mulf %319, %340 : vector<8x30xf32>
    %342 = vector.shape_cast %341 : vector<8x30xf32> to vector<1x8x30xf32>
    %cst_54 = arith.constant dense<0.000000e+00> : vector<1xf32>
    %343 = vector.multi_reduction <add>, %342, %cst_54 [1, 2] : vector<1x8x30xf32> to vector<1xf32>
    %344 = vector.shape_cast %343 : vector<1xf32> to vector<1x1x1xf32>
    %345 = vector.extract %344[0, 0, 0] : f32 from vector<1x1x1xf32>
    %cst_55 = arith.constant 1.000000e+00 : f32
    %346 = arith.mulf %cst_55, %345 : f32
    %347 = vector.shape_cast %319 : vector<8x30xf32> to vector<1x8x30xf32>
    %cst_56 = arith.constant dense<0.000000e+00> : vector<1xf32>
    %348 = vector.multi_reduction <add>, %347, %cst_56 [1, 2] : vector<1x8x30xf32> to vector<1xf32>
    %349 = vector.shape_cast %348 : vector<1xf32> to vector<1x1x1xf32>
    %350 = vector.extract %349[0, 0, 0] : f32 from vector<1x1x1xf32>
    %351 = tpu.iota {dimensions = array<i32: 1>} : vector<8x128xi32>
    %c0_i32_57 = arith.constant 0 : i32
    %352 = vector.broadcast %c0_i32_57 : i32 to vector<8x128xi32>
    %353 = arith.cmpi eq, %351, %352 : vector<8x128xi32>
    %cst_58 = arith.constant 0.000000e+00 : f32
    %354 = vector.broadcast %317 : f32 to vector<8x128xf32>
    %355 = vector.broadcast %cst_58 : f32 to vector<8x128xf32>
    %356 = arith.select %353, %354, %355 : vector<8x128xi1>, vector<8x128xf32>
    %c1_i32_59 = arith.constant 1 : i32
    %357 = vector.broadcast %c1_i32_59 : i32 to vector<8x128xi32>
    %358 = arith.cmpi eq, %351, %357 : vector<8x128xi32>
    %cst_60 = arith.constant 0.000000e+00 : f32
    %359 = vector.broadcast %310 : f32 to vector<8x128xf32>
    %360 = vector.broadcast %cst_60 : f32 to vector<8x128xf32>
    %361 = arith.select %358, %359, %360 : vector<8x128xi1>, vector<8x128xf32>
    %362 = arith.addf %356, %361 : vector<8x128xf32>
    %c2_i32_61 = arith.constant 2 : i32
    %363 = vector.broadcast %c2_i32_61 : i32 to vector<8x128xi32>
    %364 = arith.cmpi eq, %351, %363 : vector<8x128xi32>
    %cst_62 = arith.constant 0.000000e+00 : f32
    %365 = vector.broadcast %346 : f32 to vector<8x128xf32>
    %366 = vector.broadcast %cst_62 : f32 to vector<8x128xf32>
    %367 = arith.select %364, %365, %366 : vector<8x128xi1>, vector<8x128xf32>
    %368 = arith.addf %362, %367 : vector<8x128xf32>
    %c3_i32_63 = arith.constant 3 : i32
    %369 = vector.broadcast %c3_i32_63 : i32 to vector<8x128xi32>
    %370 = arith.cmpi eq, %351, %369 : vector<8x128xi32>
    %cst_64 = arith.constant 0.000000e+00 : f32
    %371 = vector.broadcast %350 : f32 to vector<8x128xf32>
    %372 = vector.broadcast %cst_64 : f32 to vector<8x128xf32>
    %373 = arith.select %370, %371, %372 : vector<8x128xi1>, vector<8x128xf32>
    %374 = arith.addf %368, %373 : vector<8x128xf32>
    %c0_65 = arith.constant 0 : index
    %c0_66 = arith.constant 0 : index
    %c0_67 = arith.constant 0 : index
    %375 = vector.load %arg3[%c0_65, %c0_66, %c0_67] : memref<1x8x128xf32, #tpu.memory_space<vmem>>, vector<1x8x128xf32>
    %376 = vector.shape_cast %375 : vector<1x8x128xf32> to vector<8x128xf32>
    %377 = vector.shape_cast %374 : vector<8x128xf32> to vector<1x8x128xf32>
    tpu.vector_store %arg3[%c0_65, %c0_66, %c0_67], %377 {strides = array<i32>} : memref<1x8x128xf32, #tpu.memory_space<vmem>>, vector<1x8x128xf32>,
    return
  }
  func.func @transform_0(%arg0: i32) -> (i32, i32) {
    %c0_i32 = arith.constant 0 : i32
    %c0_i32_0 = arith.constant 0 : i32
    return %arg0, %c0_i32 : i32, i32
  }
  func.func @transform_1(%arg0: i32) -> (i32, i32) {
    %c0_i32 = arith.constant 0 : i32
    %c0_i32_0 = arith.constant 0 : i32
    return %arg0, %c0_i32 : i32, i32
  }
  func.func @transform_2(%arg0: i32) -> (i32, i32, i32) {
    %c0_i32 = arith.constant 0 : i32
    %c0_i32_0 = arith.constant 0 : i32
    %c0_i32_1 = arith.constant 0 : i32
    return %arg0, %c0_i32, %c0_i32_0 : i32, i32, i32
  }
}

</mosaic_0001>

<bundles_post_ra>
// kernel: tpu_custom_call.1
= control target key start
LH: loop header
LB: loop body
LE: loop exit
PB: predicated region body
PF: predicated region fallthrough
CT: control target
= control target key end

     0   :  { %7 = vsyncpa [#allocation3], 0  ;;  %s1000_s0 = inlined_call_operand.hbm [shape: f32[8,360], index: 0, kind: input, shape index: {}]   ;;  %s1001_s1 = inlined_call_operand.hbm [shape: f32[8,96], index: 1, kind: input, shape index: {}]   ;;  %s1002_s2 = inlined_call_operand.hbm [shape: f32[1,8,128], index: 2, kind: output, shape index: {}]  }
   0x1   :  { %8 = vsyncpa [#allocation6], 0 }
   0x2   :  { %9 = vsyncpa [#allocation4], 0  ;;  %s764_s9 = smov [#allocation2]   ;;  %s765_s11 = smov [#allocation5]  }
   0x3   :  { %s16_s10 = sshll.u32 %s764_s9, 4  ;;  %s26_s12 = sshll.u32 %s765_s11, 4  ;;  %s17_s10 = int_to_ptr.vmem [resolvable:$true] %s16_s10  ;;  %s27_s12 = int_to_ptr.vmem [resolvable:$true] %s26_s12 }
   0x4   :  { %s706_s13 = scalar_lea.vmem %s17_s10, 384  ;;  %p711_p1 = scmp.lt.s32.totalorder %s17_s10, %s17_s10 }
   0x5   :  { %p707_p0 = scmp.ne.s32.totalorder %s17_s10, %s706_s13  ;;  %p712_p2 = scmp.lt.s32.totalorder %s706_s13, %s706_s13 }
   0x7   :  { %p713_p3 = por %p712_p2, %p711_p1 }
   0x9   :  { %p714_p4 = pnand %p713_p3, %p707_p0 }
   0xb   :  { %717 = shalt.err (!%p714_p4)
}
   0xc   :  { %19 = dma.hbm_to_vmem [thread:$0]  %s1000_s0, 384, %s17_s10, [#allocation3]  }
   0xd   :  { %s726_s16 = scalar_lea.vmem %s27_s12, 128  ;;  %p731_p6 = scmp.lt.s32.totalorder %s27_s12, %s27_s12 }
   0xe   :  { %p727_p5 = scmp.ne.s32.totalorder %s27_s12, %s726_s16  ;;  %p732_p7 = scmp.lt.s32.totalorder %s726_s16, %s726_s16 }
  0x10   :  { %p733_p8 = por %p732_p7, %p731_p6 }
  0x12   :  { %p734_p9 = pnand %p733_p8, %p727_p5 }
  0x14   :  { %737 = shalt.err (!%p734_p9)
}
  0x15   :  { %29 = dma.hbm_to_vmem [thread:$0]  %s1001_s1, 128, %s27_s12, [#allocation6]  }
  0x16   :  { %758 = dma.done.wait [#allocation3], 384  }
  0x17   :  { %759 = vsyncadd [#allocation3], 4294966912  ;;  %v40_v0 = vlaneseq }
  0x18   :  { %760 = dma.done.wait [#allocation6], 128  }
  0x19   :  { %761 = vsyncadd [#allocation6], 4294967168  ;;  %v807_v1 = vand.u32 127, %v40_v0  ;;  %v810_v4 = vld [vmem:[#allocation5] sm:$0xff]  ;;  %s766_s0 = smov 60   ;;  %s767_s1 = smov 30  }
  0x1a   :  { %62 = vrot.lane.b32.xlu1 %v810_v4, %s766_s0  ;;  %v816_v6 = vld [vmem:[#allocation2] sm:$0xff]  ;;  %v820_v7 = vld [vmem:[#allocation2 + $0x8] sm:$0xff]  ;;  %s768_s19 = smov 8   ;;  %s769_s20 = smov 106   ;;  %v829_v8 = vld [vmem:[#allocation2 + $0x10] sm:$0xff]  ;;  %vm51_vm0 = vcmask 736736  }
  0x1b   :  { %v42_v2 = vcvt.s32.f32 %v807_v1  ;;  %s770_s21 = smov 76   ;;  %s771_s22 = smov 98   ;;  %v777_v23 = vmov 0.0   ;;  %vm172_vm2 = vcmask 621568   ;;  %vm238_vm3 = vcmask 556032  }
  0x1c   :  { %s772_s23 = smov 68   ;;  %s773_s24 = smov 16   ;;  %vm70_vm4 = vcmask 244736  }
  0x1d   :  { %v43_v3 = vmul.f32 0.1, %v42_v2  ;;  %s774_s25 = smov 38   ;;  %s775_s26 = smov 114  }
  0x1e   :  { %74 = vrot.lane.b32.xlu1 %v810_v4, %s767_s1  ;;  %s776_s27 = smov 46   ;;  %s779_s28 = smov 126  }
  0x1f   :  { %v45_v5 = vmul.f32 0.033333335, %v43_v3  ;;  %s780_s29 = smov 127   ;;  %s781_s30 = smov 123  }
  0x20   :  { %s782_s3 = smov 125   ;;  %s783_s4 = smov 124  }
  0x21   :  { %47 = vrot.lane.b32.xlu0 %v45_v5, %s766_s0  ;;  %s784_s5 = smov 22   ;;  %s785_s12 = smov [#allocation7]  }
  0x22   :  { %86 = vrot.lane.b32.xlu1 %v816_v6, %s766_s0  ;;  %s627_s13 = sshll.u32 %s785_s12, 4  ;;  %s628_s13 = int_to_ptr.vmem [resolvable:$true] %s627_s13 }
  0x23   :  { %s738_s14 = scalar_lea.vmem %s628_s13, 128  ;;  %p743_p11 = scmp.lt.s32.totalorder %s628_s13, %s628_s13 }
  0x24   :  { %p739_p10 = scmp.ne.s32.totalorder %s628_s13, %s738_s14  ;;  %p744_p12 = scmp.lt.s32.totalorder %s738_s14, %s738_s14 }
  0x26   :  { %99 = vrot.lane.b32.xlu1 %v820_v7, %s768_s19  ;;  %p745_p13 = por %p744_p12, %p743_p11 }
  0x28   :  { %p746_p0 = pnand %p745_p13, %p739_p10 }
  0x2a   :  { %121 = vrot.lane.b32.xlu1 %v816_v6, %s767_s1 }
  0x2e   :  { %133 = vrot.lane.b32.xlu1 %v820_v7, %s769_s20 }
  0x32   :  { %168 = vrot.lane.b32.xlu1 %v820_v7, %s770_s21 }
  0x36   :  { %170 = vrot.lane.b32.xlu1 %v829_v8, %s770_s21 }
  0x3a   :  { %197 = vrot.lane.b32.xlu1 %v816_v6, %s771_s22 }
  0x3e   :  { %234 = vrot.lane.b32.xlu1 %v816_v6, %s772_s23 }
  0x42   :  { %236 = vrot.lane.b32.xlu1 %v820_v7, %s772_s23 }
  0x46   :  { %250 = vrot.lane.b32.xlu1 %v829_v8, %s773_s24 }
  0x4a   :  { %275 = vrot.lane.b32.xlu1 %v820_v7, %s774_s25 }
  0x4e   :  { %287 = vrot.lane.b32.xlu1 %v829_v8, %s775_s26 }
  0x8c   :  { %v63_v12 = vpop.permute.xlu1 %62 }
  0x90   :  { %v75_v13 = vpop.permute.xlu1 %74 }
  0x93   :  { %v48_v9 = vpop.permute.xlu0 %47 }
  0x94   :  { %v50_v10 = vadd.f32 %v48_v9, %v810_v4  ;;  %v87_v14 = vpop.permute.xlu1 %86 }
  0x96   :  { %v52_v11 = vsel %vm51_vm0, %v50_v10, -inf }
  0x97   :  { %53 = vmax.xlane.f32.xlu0 %v52_v11 }
  0x98   :  { %v100_v15 = vpop.permute.xlu1 %99 }
  0x9c   :  { %v122_v16 = vpop.permute.xlu1 %121 }
  0xa0   :  { %v134_v17 = vpop.permute.xlu1 %133 }
  0xa4   :  { %v169_v18 = vpop.permute.xlu1 %168 }
  0xa8   :  { %v171_v19 = vpop.permute.xlu1 %170 }
  0xa9   :  { %v173_v32 = vsel %vm172_vm2, %v169_v18, %v171_v19 }
  0xac   :  { %v198_v20 = vpop.permute.xlu1 %197 }
  0xad   :  { %209 = vrot.lane.b32.xlu0 %v829_v8, %s776_s27 }
  0xb0   :  { %v235_v21 = vpop.permute.xlu1 %234 }
  0xb4   :  { %v237_v27 = vpop.permute.xlu1 %236 }
  0xb5   :  { %v239_v40 = vsel %vm238_vm3, %v235_v21, %v237_v27 }
  0xb8   :  { %v251_v33 = vpop.permute.xlu1 %250 }
  0xbc   :  { %v276_v37 = vpop.permute.xlu1 %275 }
  0xc0   :  { %v288_v43 = vpop.permute.xlu1 %287 }
 0x120   :  { %v845_v22 = vpop.xlane.xlu0 %53 }
 0x121   :  { %vm58_vm1 = vcmp.eq.f32.partialorder %v50_v10, %v845_v22 }
 0x122   :  { %v638_v24 = vsel %vm58_vm1, 1.0, %v777_v23 }
 0x123   :  { %v77_v25 = vmul.f32 %v638_v24, %v75_v13  ;;  %v65_v26 = vmul.f32 %v638_v24, %v63_v12  ;;  %v102_v28 = vmul.f32 %v638_v24, %v100_v15  ;;  %v89_v29 = vmul.f32 %v638_v24, %v87_v14 }
 0x124   :  { %v136_v30 = vmul.f32 %v638_v24, %v134_v17  ;;  %v124_v31 = vmul.f32 %v638_v24, %v122_v16  ;;  %v175_v34 = vmul.f32 %v638_v24, %v173_v32  ;;  %v158_v35 = vmul.f32 %v638_v24, %v816_v6  ;;  %v210_v36 = vpop.permute.xlu0 %209 }
 0x125   :  { %79 = vrot.lane.b32.xlu0 %v77_v25, %s772_s23  ;;  %67 = vrot.lane.b32.xlu1 %v65_v26, %s772_s23  ;;  %v212_v38 = vmul.f32 %v638_v24, %v210_v36  ;;  %v200_v39 = vmul.f32 %v638_v24, %v198_v20  ;;  %v241_v41 = vmul.f32 %v638_v24, %v239_v40 }
 0x126   :  { %v253_v42 = vmul.f32 %v638_v24, %v251_v33  ;;  %v290_v44 = vmul.f32 %v638_v24, %v288_v43  ;;  %v278_v45 = vmul.f32 %v638_v24, %v276_v37 }
 0x129   :  { %104 = vrot.lane.b32.xlu0 %v102_v28, %s772_s23  ;;  %91 = vrot.lane.b32.xlu1 %v89_v29, %s772_s23 }
 0x12d   :  { %138 = vrot.lane.b32.xlu0 %v136_v30, %s772_s23  ;;  %126 = vrot.lane.b32.xlu1 %v124_v31, %s772_s23 }
 0x131   :  { %177 = vrot.lane.b32.xlu0 %v175_v34, %s772_s23  ;;  %160 = vrot.lane.b32.xlu1 %v158_v35, %s772_s23 }
 0x135   :  { %202 = vrot.lane.b32.xlu1 %v200_v39, %s772_s23  ;;  %214 = vrot.lane.b32.xlu0 %v212_v38, %s772_s23 }
 0x139   :  { %243 = vrot.lane.b32.xlu1 %v241_v41, %s772_s23  ;;  %255 = vrot.lane.b32.xlu0 %v253_v42, %s772_s23 }
 0x13d   :  { %280 = vrot.lane.b32.xlu1 %v278_v45, %s772_s23  ;;  %292 = vrot.lane.b32.xlu0 %v290_v44, %s772_s23 }
 0x197   :  { %v68_v46 = vpop.permute.xlu1 %67  ;;  %v80_v47 = vpop.permute.xlu0 %79 }
 0x198   :  { %v71_v48 = vsel %vm70_vm4, %v68_v46, 0.0  ;;  %v82_v49 = vsel %vm70_vm4, %v80_v47, 0.0 }
 0x199   :  { %72 = vadd.xlane.f32.xlu1 %v71_v48  ;;  %83 = vadd.xlane.f32.xlu0 %v82_v49 }
 0x19b   :  { %v92_v50 = vpop.permute.xlu1 %91  ;;  %v105_v51 = vpop.permute.xlu0 %104 }
 0x19c   :  { %v94_v52 = vsel %vm70_vm4, %v92_v50, 0.0  ;;  %v107_v56 = vsel %vm70_vm4, %v105_v51, 0.0 }
 0x19d   :  { %95 = vadd.xlane.f32.xlu0 %v94_v52 }
 0x19f   :  { %v127_v53 = vpop.permute.xlu1 %126  ;;  %v139_v54 = vpop.permute.xlu0 %138 }
 0x1a0   :  { %v129_v55 = vsel %vm70_vm4, %v127_v53, 0.0  ;;  %v141_v60 = vsel %vm70_vm4, %v139_v54, 0.0 }
 0x1a1   :  { %130 = vadd.xlane.f32.xlu1 %v129_v55  ;;  %108 = vadd.xlane.f32.xlu0 %v107_v56 }
 0x1a3   :  { %v161_v57 = vpop.permute.xlu1 %160  ;;  %v178_v58 = vpop.permute.xlu0 %177 }
 0x1a4   :  { %v163_v59 = vsel %vm70_vm4, %v161_v57, 0.0  ;;  %v180_v0 = vsel %vm70_vm4, %v178_v58, 0.0 }
 0x1a5   :  { %164 = vadd.xlane.f32.xlu1 %v163_v59  ;;  %142 = vadd.xlane.f32.xlu0 %v141_v60 }
 0x1a7   :  { %v203_v61 = vpop.permute.xlu1 %202  ;;  %v215_v62 = vpop.permute.xlu0 %214 }
 0x1a8   :  { %v205_v63 = vsel %vm70_vm4, %v203_v61, 0.0  ;;  %v217_v9 = vsel %vm70_vm4, %v215_v62, 0.0 }
 0x1a9   :  { %206 = vadd.xlane.f32.xlu1 %v205_v63  ;;  %181 = vadd.xlane.f32.xlu0 %v180_v0 }
 0x1ab   :  { %v244_v2 = vpop.permute.xlu1 %243  ;;  %v256_v3 = vpop.permute.xlu0 %255 }
 0x1ac   :  { %v246_v5 = vsel %vm70_vm4, %v244_v2, 0.0  ;;  %v258_v12 = vsel %vm70_vm4, %v256_v3, 0.0 }
 0x1ad   :  { %247 = vadd.xlane.f32.xlu1 %v246_v5  ;;  %218 = vadd.xlane.f32.xlu0 %v217_v9 }
 0x1af   :  { %v281_v10 = vpop.permute.xlu1 %280  ;;  %v293_v13 = vpop.permute.xlu0 %292 }
 0x1b0   :  { %v283_v11 = vsel %vm70_vm4, %v281_v10, 0.0  ;;  %v295_v14 = vsel %vm70_vm4, %v293_v13, 0.0 }
 0x1b1   :  { %284 = vadd.xlane.f32.xlu1 %v283_v11  ;;  %259 = vadd.xlane.f32.xlu0 %v258_v12 }
 0x1b5   :  { %296 = vadd.xlane.f32.xlu0 %v295_v14 }
 0x1c2   :  { %315 = vrot.lane.b32.xlu1 %v810_v4, %s774_s25 }
 0x222   :  { %v84_v15 = vpop.xlane.xlu0 %83  ;;  %v73_v16 = vpop.xlane.xlu1 %72 }
 0x226   :  { %v96_v17 = vpop.xlane.xlu0 %95 }
 0x227   :  { %v97_v18 = vsub.f32 %v96_v17, %v73_v16 }
 0x229   :  { %v111_v24 = vmul.f32 %v97_v18, %v97_v18 }
 0x22a   :  { %v131_v19 = vpop.xlane.xlu1 %130  ;;  %v109_v20 = vpop.xlane.xlu0 %108 }
 0x22b   :  { %v110_v21 = vsub.f32 %v109_v20, %v84_v15  ;;  %v132_v26 = vsub.f32 %v131_v19, %v73_v16 }
 0x22d   :  { %v112_v25 = vmul.f32 %v110_v21, %v110_v21  ;;  %v145_v32 = vmul.f32 %v132_v26, %v132_v26 }
 0x22e   :  { %v165_v27 = vpop.xlane.xlu1 %164  ;;  %v143_v28 = vpop.xlane.xlu0 %142 }
 0x22f   :  { %v113_v29 = vadd.f32 %v112_v25, %v111_v24  ;;  %v144_v30 = vsub.f32 %v143_v28, %v84_v15  ;;  %v166_v31 = vsub.f32 %v165_v27, %v73_v16 }
 0x231   :  { %686 = vrsqrt.f32 %v113_v29  ;;  %v146_v33 = vmul.f32 %v144_v30, %v144_v30  ;;  %v184_v38 = vmul.f32 %v166_v31, %v166_v31  ;;  %vm116_vm5 = vcmp.eq.f32.partialorder %v113_v29, inf }
 0x232   :  { %v207_v34 = vpop.xlane.xlu1 %206  ;;  %v182_v35 = vpop.xlane.xlu0 %181  ;;  %v119_v3 = vand.u32 2147483648, %v113_v29  ;;  %vm118_vm7 = vcmp.eq.f32.partialorder %v113_v29, 0.0 }
 0x233   :  { %v183_v36 = vsub.f32 %v182_v35, %v84_v15  ;;  %v147_v37 = vadd.f32 %v146_v33, %v145_v32  ;;  %v208_v40 = vsub.f32 %v207_v34, %v73_v16  ;;  %v778_v35 = vmov 0  }
 0x235   :  { %v185_v39 = vmul.f32 %v183_v36, %v183_v36  ;;  %688 = vrsqrt.f32 %v147_v37  ;;  %v221_v46 = vmul.f32 %v208_v40, %v208_v40  ;;  %vm150_vm6 = vcmp.eq.f32.partialorder %v147_v37, inf }
 0x236   :  { %v248_v41 = vpop.xlane.xlu1 %247  ;;  %v219_v42 = vpop.xlane.xlu0 %218  ;;  %v153_v5 = vand.u32 2147483648, %v147_v37  ;;  %vm152_vm8 = vcmp.eq.f32.partialorder %v147_v37, 0.0 }
 0x237   :  { %v186_v43 = vadd.f32 %v185_v39, %v184_v38  ;;  %v220_v44 = vsub.f32 %v219_v42, %v84_v15  ;;  %v249_v45 = vsub.f32 %v248_v41, %v73_v16 }
 0x239   :  { %690 = vrsqrt.f32 %v186_v43  ;;  %v222_v47 = vmul.f32 %v220_v44, %v220_v44  ;;  %v262_v52 = vmul.f32 %v249_v45, %v249_v45  ;;  %vm189_vm9 = vcmp.eq.f32.partialorder %v186_v43, inf }
 0x23a   :  { %v260_v48 = vpop.xlane.xlu0 %259  ;;  %v285_v49 = vpop.xlane.xlu1 %284  ;;  %v192_v14 = vand.u32 2147483648, %v186_v43  ;;  %vm191_vm11 = vcmp.eq.f32.partialorder %v186_v43, 0.0 }
 0x23b   :  { %v261_v50 = vsub.f32 %v260_v48, %v84_v15  ;;  %v223_v51 = vadd.f32 %v222_v47, %v221_v46  ;;  %v286_v55 = vsub.f32 %v285_v49, %v73_v16 }
 0x23d   :  { %v263_v53 = vmul.f32 %v261_v50, %v261_v50  ;;  %692 = vrsqrt.f32 %v223_v51  ;;  %v299_v60 = vmul.f32 %v286_v55, %v286_v55  ;;  %vm226_vm13 = vcmp.eq.f32.partialorder %v223_v51, inf }
 0x23e   :  { %v687_v54 = vpop.eup %686  ;;  %v297_v56 = vpop.xlane.xlu0 %296  ;;  %v229_v20 = vand.u32 2147483648, %v223_v51  ;;  %vm228_vm14 = vcmp.eq.f32.partialorder %v223_v51, 0.0 }
 0x23f   :  { %v264_v57 = vadd.f32 %v263_v53, %v262_v52  ;;  %v298_v58 = vsub.f32 %v297_v56, %v84_v15  ;;  %v115_v59 = vmul.f32 %v687_v54, %v113_v29 }
 0x241   :  { %694 = vrsqrt.f32 %v264_v57  ;;  %v300_v61 = vmul.f32 %v298_v58, %v298_v58  ;;  %v117_v63 = vsel %vm116_vm5, %v113_v29, %v115_v59  ;;  %vm267_vm15 = vcmp.eq.f32.partialorder %v264_v57, inf }
 0x242   :  { %v689_v62 = vpop.eup %688  ;;  %v881_v12 = vsel %vm118_vm7, %v119_v3, %v117_v63  ;;  %v270_v28 = vand.u32 2147483648, %v264_v57  ;;  %vm269_vm1 = vcmp.eq.f32.partialorder %v264_v57, 0.0 }
 0x243   :  { %v149_v0 = vmul.f32 %v689_v62, %v147_v37  ;;  %v301_v2 = vadd.f32 %v300_v61, %v299_v60 }
 0x245   :  { %v151_v10 = vsel %vm150_vm6, %v147_v37, %v149_v0  ;;  %696 = vrsqrt.f32 %v301_v2  ;;  %vm304_vm5 = vcmp.eq.f32.partialorder %v301_v2, inf  ;;  %v307_v34 = vand.u32 2147483648, %v301_v2 }
 0x246   :  { %v691_v9 = vpop.eup %690  ;;  %v883_v13 = vsel %vm152_vm8, %v153_v5, %v151_v10  ;;  %vm306_vm6 = vcmp.eq.f32.partialorder %v301_v2, 0.0 }
 0x247   :  { %v188_v11 = vmul.f32 %v691_v9, %v186_v43  ;;  %vm155_vm10 = vcmp.lt.f32.partialorder %v883_v13, %v881_v12 }
 0x248   :  { %v157_v18 = vsel %vm155_vm10, %v883_v13, %v881_v12  ;;  %v156_v36 = vsel %vm155_vm10, 1, %v778_v35 }
 0x249   :  { %v190_v15 = vsel %vm189_vm9, %v186_v43, %v188_v11 }
 0x24a   :  { %v887_v16 = vsel %vm191_vm11, %v192_v14, %v190_v15  ;;  %v693_v17 = vpop.eup %692 }
 0x24b   :  { %v225_v19 = vmul.f32 %v693_v17, %v223_v51  ;;  %vm194_vm12 = vcmp.lt.f32.partialorder %v887_v16, %v157_v18 }
 0x24c   :  { %v196_v26 = vsel %vm194_vm12, %v887_v16, %v157_v18  ;;  %v195_v37 = vsel %vm194_vm12, 2, %v156_v36  ;;  %vm55_vm12 = vcmp.gt.f32.partialorder %v845_v22, 1.0 }
 0x24d   :  { %v227_v24 = vsel %vm226_vm13, %v223_v51, %v225_v19  ;;  %v925_v53 = vsel %vm55_vm12, 1.0, %v777_v23 }
 0x24e   :  { %v695_v21 = vpop.eup %694  ;;  %v898_v27 = vsel %vm228_vm14, %v229_v20, %v227_v24 }
 0x24f   :  { %v266_v25 = vmul.f32 %v695_v21, %v264_v57  ;;  %vm231_vm0 = vcmp.lt.f32.partialorder %v898_v27, %v196_v26 }
 0x250   :  { %v233_v32 = vsel %vm231_vm0, %v898_v27, %v196_v26  ;;  %v232_v39 = vsel %vm231_vm0, 3, %v195_v37 }
 0x251   :  { %v268_v29 = vsel %vm267_vm15, %v264_v57, %v266_v25  ;;  %v316_v25 = vpop.permute.xlu1 %315 }
 0x252   :  { %v271_v30 = vsel %vm269_vm1, %v270_v28, %v268_v29  ;;  %v697_v31 = vpop.eup %696 }
 0x253   :  { %v303_v33 = vmul.f32 %v697_v31, %v301_v2  ;;  %vm272_vm2 = vcmp.lt.f32.partialorder %v271_v30, %v233_v32 }
 0x254   :  { %v274_v40 = vsel %vm272_vm2, %v271_v30, %v233_v32  ;;  %v273_v42 = vsel %vm272_vm2, 4, %v232_v39 }
 0x255   :  { %v305_v38 = vsel %vm304_vm5, %v301_v2, %v303_v33 }
 0x256   :  { %v308_v41 = vsel %vm306_vm6, %v307_v34, %v305_v38 }
 0x257   :  { %vm309_vm7 = vcmp.lt.f32.partialorder %v308_v41, %v274_v40 }
 0x258   :  { %v907_v43 = vsel %vm309_vm7, 5, %v273_v42  ;;  %v311_v44 = vsel %vm309_vm7, %v308_v41, %v274_v40 }
 0x259   :  { %vm396_vm8 = vcmp.eq.s32.totalorder %v907_v43, 2  ;;  %vm364_vm9 = vcmp.eq.s32.totalorder %v907_v43, 1  ;;  %vm433_vm11 = vcmp.eq.s32.totalorder %v907_v43, 3  ;;  %vm465_vm10 = vcmp.eq.s32.totalorder %v907_v43, 4 }
 0x25a   :  { %v647_v45 = vsel %vm396_vm8, 1.0, %v777_v23  ;;  %v645_v46 = vsel %vm364_vm9, 1.0, %v777_v23  ;;  %v649_v49 = vsel %vm433_vm11, 1.0, %v777_v23  ;;  %v651_v52 = vsel %vm465_vm10, 1.0, %v777_v23 }
 0x25b   :  { %v405_v47 = vmul.f32 %v647_v45, %v820_v7  ;;  %v367_v48 = vmul.f32 %v645_v46, %v816_v6  ;;  %v436_v50 = vmul.f32 %v649_v49, %v816_v6  ;;  %v373_v51 = vmul.f32 %v645_v46, %v820_v7 }
 0x25c   :  { %vm323_vm13 = vcmp.lt.f32.partialorder %v311_v44, 2.0  ;;  %v379_v55 = vsub.f32 %v887_v16, %v311_v44  ;;  %v347_v22 = vsub.f32 %v883_v13, %v311_v44  ;;  %v399_v56 = vmul.f32 %v647_v45, %v816_v6 }
 0x25d   :  { %409 = vrot.lane.b32.xlu0 %v405_v47, %s772_s23  ;;  %369 = vrot.lane.b32.xlu1 %v367_v48, %s771_s22  ;;  %v640_v54 = vsel %vm323_vm13, 1.0, %v777_v23  ;;  %v406_v57 = vmul.f32 %v647_v45, %v829_v8  ;;  %v468_v59 = vmul.f32 %v651_v52, %v816_v6  ;;  %v486_v60 = vsub.f32 %v308_v41, %v311_v44 }
 0x25e   :  { %v326_v58 = vmul.f32 %v640_v54, %v925_v53  ;;  %vm380_vm14 = vcmp.gt.f32.partialorder %v379_v55, 0.2  ;;  %vm348_vm15 = vcmp.gt.f32.partialorder %v347_v22, 0.2  ;;  %v416_v63 = vsub.f32 %v898_v27, %v311_v44 }
 0x25f   :  { %v646_v61 = vsel %vm380_vm14, 1.0, %v777_v23  ;;  %v644_v62 = vsel %vm348_vm15, 1.0, %v777_v23  ;;  %v448_v0 = vsub.f32 %v271_v30, %v311_v44  ;;  %vm487_vm0 = vcmp.gt.f32.partialorder %v486_v60, 0.2 }
 0x260   :  { %v939_v2 = vmul.f32 %v646_v61, %v326_v58  ;;  %v941_v3 = vmul.f32 %v644_v62, %v326_v58  ;;  %v328_v5 = vsub.f32 %v881_v12, %v311_v44  ;;  %vm503_vm1 = vcmp.eq.s32.totalorder %v907_v43, 5 }
 0x261   :  { %438 = vrot.lane.b32.xlu0 %v436_v50, %s774_s25  ;;  %375 = vrot.lane.b32.xlu1 %v373_v51, %s771_s22  ;;  %v652_v9 = vsel %vm487_vm0, 1.0, %v777_v23  ;;  %vm417_vm2 = vcmp.gt.f32.partialorder %v416_v63, 0.2  ;;  %vm449_vm5 = vcmp.gt.f32.partialorder %v448_v0, 0.2  ;;  %v480_v14 = vmul.f32 %v651_v52, %v829_v8 }
 0x262   :  { %v948_v10 = vmul.f32 %v652_v9, %v326_v58  ;;  %v648_v11 = vsel %vm417_vm2, 1.0, %v777_v23  ;;  %v650_v13 = vsel %vm449_vm5, 1.0, %v777_v23  ;;  %vm329_vm6 = vcmp.gt.f32.partialorder %v328_v5, 0.2 }
 0x263   :  { %v420_v12 = vmul.f32 %v648_v11, %v326_v58  ;;  %v953_v15 = vmul.f32 %v650_v13, %v326_v58  ;;  %v641_v16 = vsel %vm329_vm6, 1.0, %v777_v23  ;;  %v653_v17 = vsel %vm503_vm1, 1.0, %v777_v23 }
 0x264   :  { %v332_v18 = vmul.f32 %v641_v16, %v326_v58  ;;  %v512_v19 = vmul.f32 %v653_v17, %v829_v8  ;;  %v442_v20 = vmul.f32 %v649_v49, %v829_v8  ;;  %v469_v21 = vmul.f32 %v651_v52, %v820_v7 }
 0x265   :  { %472 = vrot.lane.b32.xlu0 %v468_v59, %s768_s19  ;;  %401 = vrot.lane.b32.xlu1 %v399_v56, %s772_s23  ;;  %v506_v24 = vmul.f32 %v653_v17, %v820_v7  ;;  %vm312_vm7 = vcmp.eq.s32.totalorder %v807_v1, %v907_v43  ;;  %vm319_vm8 = vcmask 48128   ;;  %vm340_vm9 = vcmp.eq.s32.totalorder %v907_v43, 0 }
 0x266   :  { %v639_v26 = vsel %vm312_vm7, 1.0, %v777_v23  ;;  %v643_v28 = vsel %vm340_vm9, 1.0, %v777_v23  ;;  %vm476_vm11 = vcmask 64512   ;;  %vm522_vm13 = vcmask 7168  }
 0x267   :  { %v318_v27 = vmul.f32 %v639_v26, %v316_v25  ;;  %v343_v29 = vmul.f32 %v643_v28, %v816_v6  ;;  %v345_v38 = vmul.f32 %v643_v28, %v820_v7  ;;  %vm608_vm14 = vcmp.eq.s32.totalorder %v807_v1, 1 }
 0x268   :  { %vm612_vm15 = vcmp.eq.s32.totalorder %v807_v1, 2  ;;  %vm616_vm0 = vcmp.eq.s32.totalorder %v807_v1, 3 }
 0x269   :  { %482 = vrot.lane.b32.xlu0 %v480_v14, %s768_s19  ;;  %411 = vrot.lane.b32.xlu1 %v406_v57, %s772_s23  ;;  %v320_v8 = vsel %vm319_vm8, %v318_v27, 0.0 }
 0x26d   :  { %514 = vrot.lane.b32.xlu0 %v512_v19, %s769_s20  ;;  %444 = vrot.lane.b32.xlu1 %v442_v20, %s774_s25 }
 0x271   :  { %474 = vrot.lane.b32.xlu1 %v469_v21, %s768_s19 }
 0x275   :  { %508 = vrot.lane.b32.xlu1 %v506_v24, %s769_s20 }
 0x28c   :  { %321 = vadd.xlane.f32.xlu0 %v320_v8 }
 0x2cf   :  { %v410_v30 = vpop.permute.xlu0 %409  ;;  %v370_v31 = vpop.permute.xlu1 %369 }
 0x2d0   :  { %v372_v32 = vadd.f32 %v370_v31, %v343_v29 }
 0x2d3   :  { %v439_v33 = vpop.permute.xlu0 %438  ;;  %v376_v34 = vpop.permute.xlu1 %375 }
 0x2d4   :  { %v378_v40 = vadd.f32 %v376_v34, %v345_v38 }
 0x2d7   :  { %v473_v35 = vpop.permute.xlu0 %472  ;;  %v402_v36 = vpop.permute.xlu1 %401 }
 0x2d8   :  { %v404_v37 = vadd.f32 %v402_v36, %v372_v32 }
 0x2da   :  { %v441_v39 = vadd.f32 %v439_v33, %v404_v37 }
 0x2db   :  { %v412_v41 = vpop.permute.xlu1 %411  ;;  %v483_v43 = vpop.permute.xlu0 %482 }
 0x2dc   :  { %v413_v42 = vsel %vm238_vm3, %v410_v30, %v412_v41 }
 0x2dd   :  { %v415_v44 = vadd.f32 %v413_v42, %v378_v40 }
 0x2df   :  { %v445_v45 = vpop.permute.xlu1 %444  ;;  %v515_v47 = vpop.permute.xlu0 %514 }
 0x2e0   :  { %v447_v46 = vadd.f32 %v445_v45, %v415_v44 }
 0x2e2   :  { %v485_v6 = vadd.f32 %v483_v43, %v447_v46 }
 0x2e3   :  { %v475_v48 = vpop.permute.xlu1 %474 }
 0x2e4   :  { %v477_v49 = vsel %vm476_vm11, %v473_v35, %v475_v48  ;;  %v517_v50 = vadd.f32 %v515_v47, %v485_v6  ;;  %v549_v48 = vmul.f32 %v925_v53, %v810_v4 }
 0x2e5   :  { %v479_v51 = vadd.f32 %v477_v49, %v441_v39 }
 0x315   :  { %v322_v52 = vpop.xlane.xlu0 %321 }
 0x316   :  { %v327_v54 = vsub.f32 %v322_v52, %v810_v4 }
 0x318   :  { %vm333_vm10 = vcmp.lt.f32.partialorder %v327_v54, 0.2 }
 0x319   :  { %v642_v7 = vsel %vm333_vm10, 1.0, %v777_v23 }
 0x31a   :  { %v384_v55 = vmul.f32 %v642_v7, %v939_v2  ;;  %v352_v22 = vmul.f32 %v642_v7, %v941_v3  ;;  %v336_v56 = vmul.f32 %v642_v7, %v332_v18  ;;  %v491_v58 = vmul.f32 %v642_v7, %v948_v10  ;;  %v509_v2 = vpop.permute.xlu1 %508 }
 0x31b   :  { %v421_v59 = vmul.f32 %v642_v7, %v420_v12  ;;  %v453_v60 = vmul.f32 %v642_v7, %v953_v15  ;;  %v511_v33 = vadd.f32 %v509_v2, %v479_v51 }
 0x31c   :  { %386 = vrot.lane.b32.xlu1 %v384_v55, %s779_s28  ;;  %354 = vrot.lane.b32.xlu0 %v352_v22, %s780_s29  ;;  %v338_v57 = vmul.f32 %v336_v56, %v327_v54  ;;  %v358_v23 = vmul.f32 %v352_v22, %v327_v54  ;;  %v390_v61 = vmul.f32 %v384_v55, %v327_v54 }
 0x31d   :  { %v427_v62 = vmul.f32 %v421_v59, %v327_v54  ;;  %v497_v63 = vmul.f32 %v491_v58, %v327_v54  ;;  %v459_v0 = vmul.f32 %v453_v60, %v327_v54  ;;  %v550_v34 = vsub.f32 %v511_v33, %v810_v4 }
 0x31f   :  { %v551_v35 = vand.u32 2147483647, %v550_v34 }
 0x320   :  { %493 = vrot.lane.b32.xlu1 %v491_v58, %s781_s30  ;;  %423 = vrot.lane.b32.xlu0 %v421_v59, %s782_s3 }
 0x321   :  { %v553_v36 = vmul.f32 0.5, %v551_v35  ;;  %v654_v39 = vadd.f32 -0.5, %v551_v35  ;;  %vm552_vm12 = vcmp.lt.f32.partialorder %v551_v35, 1.0 }
 0x323   :  { %v554_v38 = vmul.f32 %v553_v36, %v551_v35 }
 0x324   :  { %455 = vrot.lane.b32.xlu0 %v453_v60, %s783_s4  ;;  %360 = vrot.lane.b32.xlu1 %v358_v23, %s780_s29 }
 0x325   :  { %v556_v40 = vsel %vm552_vm12, %v554_v38, %v654_v39 }
 0x328   :  { %392 = vrot.lane.b32.xlu0 %v390_v61, %s779_s28  ;;  %429 = vrot.lane.b32.xlu1 %v427_v62, %s782_s3 }
 0x32c   :  { %499 = vrot.lane.b32.xlu0 %v497_v63, %s781_s30  ;;  %461 = vrot.lane.b32.xlu1 %v459_v0, %s783_s4 }
 0x330   :  { %557 = vrot.lane.b32.xlu1 %v810_v4, %s784_s5 }
 0x38e   :  { %v387_v3 = vpop.permute.xlu1 %386  ;;  %v355_v5 = vpop.permute.xlu0 %354 }
 0x38f   :  { %v357_v9 = vadd.f32 %v355_v5, %v336_v56 }
 0x391   :  { %v389_v10 = vadd.f32 %v387_v3, %v357_v9 }
 0x392   :  { %v494_v11 = vpop.permute.xlu1 %493  ;;  %v424_v13 = vpop.permute.xlu0 %423 }
 0x393   :  { %v426_v14 = vadd.f32 %v424_v13, %v389_v10 }
 0x396   :  { %v456_v12 = vpop.permute.xlu0 %455  ;;  %v361_v15 = vpop.permute.xlu1 %360 }
 0x397   :  { %v458_v16 = vadd.f32 %v456_v12, %v426_v14  ;;  %v363_v17 = vadd.f32 %v361_v15, %v338_v57 }
 0x399   :  { %v496_v18 = vadd.f32 %v494_v11, %v458_v16 }
 0x39a   :  { %v393_v19 = vpop.permute.xlu0 %392  ;;  %v430_v20 = vpop.permute.xlu1 %429 }
 0x39b   :  { %v395_v21 = vadd.f32 %v393_v19, %v363_v17 }
 0x39d   :  { %v432_v24 = vadd.f32 %v430_v20, %v395_v21 }
 0x39e   :  { %v462_v25 = vpop.permute.xlu1 %461  ;;  %v500_v37 = vpop.permute.xlu0 %499 }
 0x39f   :  { %v464_v26 = vadd.f32 %v462_v25, %v432_v24 }
 0x3a1   :  { %v502_v43 = vadd.f32 %v500_v37, %v464_v26 }
 0x3a2   :  { %v558_v27 = vpop.permute.xlu1 %557 }
 0x3a3   :  { %v560_v8 = vsub.f32 %v517_v50, %v558_v27 }
 0x3a5   :  { %v561_v28 = vand.u32 2147483647, %v560_v8 }
 0x3a7   :  { %v563_v29 = vmul.f32 0.5, %v561_v28  ;;  %v655_v31 = vadd.f32 -0.5, %v561_v28  ;;  %vm562_vm3 = vcmp.lt.f32.partialorder %v561_v28, 1.0 }
 0x3a9   :  { %v564_v30 = vmul.f32 %v563_v29, %v561_v28 }
 0x3ab   :  { %v566_v32 = vsel %vm562_vm3, %v564_v30, %v655_v31 }
 0x3ac   :  { %568 = vrot.lane.b32.xlu0 %v566_v32, %s770_s21 }
 0x41e   :  { %v569_v41 = vpop.permute.xlu0 %568 }
 0x41f   :  { %v571_v42 = vadd.f32 %v569_v41, %v556_v40 }
 0x421   :  { %573 = vrot.lane.b32.xlu1 %v571_v42, %s766_s0 }
 0x425   :  { %519 = vrot.lane.b32.xlu1 %v496_v18, %s774_s25 }
 0x429   :  { %535 = vrot.lane.b32.xlu1 %v502_v43, %s774_s25 }
 0x493   :  { %v574_v44 = vpop.permute.xlu1 %573 }
 0x494   :  { %v576_v49 = vmul.f32 %v574_v44, %v549_v48 }
 0x497   :  { %v520_v45 = vpop.permute.xlu1 %519 }
 0x498   :  { %v523_v46 = vsel %vm522_vm13, %v520_v45, 0.0 }
 0x499   :  { %524 = vadd.xlane.f32.xlu0 %v523_v46 }
 0x49b   :  { %v536_v6 = vpop.permute.xlu1 %535 }
 0x49c   :  { %v538_v47 = vsel %vm522_vm13, %v536_v6, 0.0 }
 0x49d   :  { %539 = vadd.xlane.f32.xlu1 %v538_v47 }
 0x4ae   :  { %592 = vrot.lane.b32.xlu1 %v549_v48, %s772_s23 }
 0x4af   :  { %578 = vrot.lane.b32.xlu0 %v576_v49, %s772_s23 }
 0x522   :  { %v525_v50 = vpop.xlane.xlu0 %524 }
 0x523   :  { %v526_v51 = vrot.slane %v525_v50, 4 }
 0x525   :  { %v527_v52 = vadd.f32 %v526_v51, %v525_v50 }
 0x526   :  { %v579_v54 = vpop.permute.xlu0 %578  ;;  %v540_v7 = vpop.xlane.xlu1 %539 }
 0x527   :  { %v528_v55 = vrot.slane %v527_v52, 2  ;;  %v541_v22 = vrot.slane %v540_v7, 4  ;;  %v581_v56 = vsel %vm70_vm4, %v579_v54, 0.0 }
 0x528   :  { %582 = vadd.xlane.f32.xlu0 %v581_v56 }
 0x529   :  { %v542_v57 = vadd.f32 %v541_v22, %v540_v7  ;;  %v529_v58 = vadd.f32 %v528_v55, %v527_v52 }
 0x52a   :  { %v593_v59 = vpop.permute.xlu1 %592 }
 0x52b   :  { %v543_v60 = vrot.slane %v542_v57, 2  ;;  %v595_v4 = vsel %vm70_vm4, %v593_v59, 0.0  ;;  %v530_v53 = vrot.slane %v529_v58, 1  ;;  %vm605_vm4 = vcmp.eq.s32.totalorder %v807_v1, 0 }
 0x52c   :  { %596 = vadd.xlane.f32.xlu1 %v595_v4 }
 0x52d   :  { %v531_v23 = vadd.f32 %v530_v53, %v529_v58  ;;  %v544_v61 = vadd.f32 %v543_v60, %v542_v57 }
 0x52f   :  { %656 = vpush %v531_v23  ;;  %v545_v62 = vrot.slane %v544_v61, 1 }
 0x531   :  { %v546_v63 = vadd.f32 %v545_v62, %v544_v61 }
 0x533   :  { %658 = vpush %v546_v63 }
 0x560   :  { %s657_s6 = spop %656 }
 0x561   :  { %s533_s8 = smul.f32 0.2, %s657_s6  ;;  %v609_v20 = vstv %s657_s6 }
 0x562   :  { %v610_v25 = vsel %vm608_vm14, %v609_v20, 0.0 }
 0x564   :  { %s659_s7 = spop %658 }
 0x565   :  { %s548_s9 = ssub.f32 %s533_s8, %s659_s7 }
 0x567   :  { %v606_v19 = vstv %s548_s9 }
 0x568   :  { %v607_v21 = vsel %vm605_vm4, %v606_v19, 0.0 }
 0x569   :  { %v611_v27 = vadd.f32 %v610_v25, %v607_v21 }
 0x5b1   :  { %v583_v0 = vpop.xlane.xlu0 %582 }
 0x5b2   :  { %v584_v2 = vrot.slane %v583_v0, 4 }
 0x5b4   :  { %v585_v3 = vadd.f32 %v584_v2, %v583_v0 }
 0x5b5   :  { %v597_v5 = vpop.xlane.xlu1 %596 }
 0x5b6   :  { %v586_v9 = vrot.slane %v585_v3, 2  ;;  %v598_v10 = vrot.slane %v597_v5, 4 }
 0x5b8   :  { %v587_v11 = vadd.f32 %v586_v9, %v585_v3  ;;  %v599_v13 = vadd.f32 %v598_v10, %v597_v5 }
 0x5ba   :  { %v600_v14 = vrot.slane %v599_v13, 2  ;;  %v588_v12 = vrot.slane %v587_v11, 1 }
 0x5bc   :  { %v601_v15 = vadd.f32 %v600_v14, %v599_v13  ;;  %v589_v16 = vadd.f32 %v588_v12, %v587_v11 }
 0x5be   :  { %660 = vpush %v589_v16  ;;  %v602_v17 = vrot.slane %v601_v15, 1 }
 0x5c0   :  { %v603_v18 = vadd.f32 %v602_v17, %v601_v15 }
 0x5c2   :  { %662 = vpush %v603_v18 }
 0x5ef   :  { %s661_s10 = spop %660 }
 0x5f0   :  { %v613_v24 = vstv %s661_s10 }
 0x5f1   :  { %v614_v26 = vsel %vm612_vm15, %v613_v24, 0.0 }
 0x5f2   :  { %v615_v8 = vadd.f32 %v614_v26, %v611_v27 }
 0x5f3   :  { %s663_s11 = spop %662 }
 0x5f4   :  { %v617_v28 = vstv %s663_s11 }
 0x5f5   :  { %v618_v29 = vsel %vm616_vm0, %v617_v28, 0.0 }
 0x5f6   :  { %v619_v30 = vadd.f32 %v618_v29, %v615_v8 }
 0x5f8   :  { %620 = vst [vmem:[#allocation7] sm:$0xff] %v619_v30 }
 0x5f9   :  { %749 = shalt.err (!%p746_p0)
}
 0x5fa   :  { %630 = dma.vmem_to_hbm [thread:$0]  %s628_s13, 128, %s1002_s2, [#allocation4]  }
 0x5fb   :  { %762 = dma.done.wait [#allocation4], 128  }
 0x5fc   :  { %763 = vsyncadd [#allocation4], 4294967168 }
 0x5fd   :  { %634 = vsyncpa [#allocation3], 1 }
 0x5fe   :  { %635 = vsyncpa [#allocation6], 1 }
 0x5ff   :  { %636 = vsyncpa [#allocation4], 1 }

</bundles_post_ra>
